<compile_context>
chip_gen: v7x
topology: tpu7x:2x2x1
jax: 0.10.0
libtpu: 0.0.40
codegen_flags: <defaults>
</compile_context>

<pallas_src>
import functools

import jax
import jax.numpy as jnp
from jax.experimental import pallas as pl
from jax.experimental.pallas import tpu as pltpu


def _round_up(x, m):
    return ((x + m - 1) // m) * m


def _patch_embed_kernel(x_ref, w_ref, pos_ref, o_ref):
    # x_ref: (tn, Kp) bf16   -- one batch's tile of flattened patches
    # w_ref: (Kp, te) bf16   -- conv weight tile
    # pos_ref: (tn, te) f32  -- folded (pos @ W + b) epilogue, shared over batch
    acc = jnp.dot(x_ref[...], w_ref[...],
                  preferred_element_type=jnp.float32)       # MXU, f32 accumulate
    o_ref[...] = (acc + pos_ref[...]).astype(o_ref.dtype)   # fused pos+bias epilogue


def _bilinear_align_corners(img, out_h, out_w):
    """F.interpolate(mode='bilinear', align_corners=True) for a 2-D image."""
    src_h, src_w = img.shape

    def coords(out_sz, src_sz):
        if out_sz == 1:
            return jnp.zeros((1,), jnp.float32)
        return jnp.arange(out_sz, dtype=jnp.float32) * ((src_sz - 1) / (out_sz - 1))

    ys = coords(out_h, src_h)
    xs = coords(out_w, src_w)
    y0 = jnp.floor(ys).astype(jnp.int32)
    x0 = jnp.floor(xs).astype(jnp.int32)
    y1 = jnp.minimum(y0 + 1, src_h - 1)
    x1 = jnp.minimum(x0 + 1, src_w - 1)
    wy = (ys - y0.astype(jnp.float32))[:, None]
    wx = (xs - x0.astype(jnp.float32))[None, :]

    top = img[y0][:, x0] * (1.0 - wx) + img[y0][:, x1] * wx
    bot = img[y1][:, x0] * (1.0 - wx) + img[y1][:, x1] * wx
    return top * (1.0 - wy) + bot * wy                      # (out_h, out_w)


def _extract_patches(x, p):
    """(B, C, H, W) -> (B, (H/p)*(W/p), C*p*p), patch index = row*wp + col."""
    b, c, h, w = x.shape
    hp, wp = h // p, w // p
    x = x.reshape(b, c, hp, p, wp, p)
    x = x.transpose(0, 2, 4, 1, 3, 5)                       # (B, hp, wp, C, p, p)
    return x.reshape(b, hp * wp, c * p * p)


def patch_embedding_2d(x, pos_param, conv_w, conv_b, patch_size,
                       compute_dtype=jnp.bfloat16):
    """Full forward; returns (B, num_patches, embedding_dim)."""
    B, C, H, W = x.shape
    E = conv_w.shape[0]
    P = patch_size
    hp, wp = H // P, W // P
    N, K = hp * wp, C * P * P

    # --- glue: bilinear resize of position embedding (align_corners=True) ---
    pos = _bilinear_align_corners(pos_param[0, 0], H, W)    # (H, W)
    pos_img = jnp.broadcast_to(pos[None, None], (1, C, H, W))

    # --- glue: patch extraction + weight reshape ---
    x_patches = _extract_patches(x, P)                      # (B, N, K)
    pos_patches = _extract_patches(pos_img, P)[0]           # (N, K), shared over batch
    w_mat = conv_w.reshape(E, K).T                          # (K, E)

    # --- fold position embedding + bias into one (N, E) epilogue term (f32) ---
    # (x + pos) @ W + b == x @ W + (pos @ W + b)
    pos_proj = pos_patches @ w_mat + conv_b[None, :]        # (N, E) f32, tiny matmul

    # --- pad to TPU-friendly tiles: lanes multiple of 128, sublanes of 8 ---
    Kp = _round_up(K, 128)                                  # contraction dim, full-lane
    te = min(256, _round_up(E, 128))                        # output lane tile
    Ep = _round_up(E, te)
    tn = min(256, _round_up(N, 8))                          # patch-row tile (sublanes)
    Np = _round_up(N, tn)

    itemsize = jnp.dtype(compute_dtype).itemsize
    out_itemsize = jnp.dtype(x.dtype).itemsize

    x_p = jnp.zeros((B, Np, Kp), compute_dtype).at[:, :N, :K].set(
        x_patches.astype(compute_dtype))
    w_p = jnp.zeros((Kp, Ep), compute_dtype).at[:K, :E].set(
        w_mat.astype(compute_dtype))
    pos_p = jnp.zeros((Np, Ep), jnp.float32).at[:N, :E].set(pos_proj)

    cost = pl.CostEstimate(
        flops=2 * B * Np * Kp * Ep,
        transcendentals=0,
        bytes_accessed=(B * Np * Kp * itemsize      # x patches
                        + Kp * Ep * itemsize        # conv weight
                        + Np * Ep * 4               # folded pos term (streamed once)
                        + B * Np * Ep * out_itemsize),
    )

    out_p = pl.pallas_call(
        _patch_embed_kernel,
        out_shape=jax.ShapeDtypeStruct((B, Np, Ep), x.dtype),
        grid=(B, Np // tn, Ep // te),
        in_specs=[
            pl.BlockSpec((None, tn, Kp), lambda b, i, j: (b, i, 0)),  # x patches (bf16)
            pl.BlockSpec((Kp, te), lambda b, i, j: (0, j)),           # conv weight (bf16)
            pl.BlockSpec((tn, te), lambda b, i, j: (i, j)),           # pos+bias (f32, batch-shared)
        ],
        out_specs=pl.BlockSpec((None, tn, te), lambda b, i, j: (b, i, j)),
        compiler_params=pltpu.CompilerParams(
            dimension_semantics=("parallel", "parallel", "parallel")),
        cost_estimate=cost,
    )(x_p, w_p, pos_p)

    return out_p[:, :N, :E]                                 # (B, N, E)


if __name__ == "__main__":
    # Small shapes consistent with the module:
    #   batch=2, in_c=4, H=W=16, patch_size=4, embedding_dim=32
    B, C, H, W = 2, 4, 16, 16
    P, E = 4, 32

    key = jax.random.PRNGKey(0)
    kx, kpos, kw, kb = jax.random.split(key, 4)

    x = jax.random.normal(kx, (B, C, H, W), jnp.float32)
    # nn.Parameter(torch.randn([1, 1, 256, 256]))
    pos_param = jax.random.normal(kpos, (1, 1, 256, 256), jnp.float32)
    # Conv2d(in_c, embedding_dim, kernel_size=patch, stride=patch) params
    conv_w = 0.05 * jax.random.normal(kw, (E, C, P, P), jnp.float32)
    conv_b = 0.05 * jax.random.normal(kb, (E,), jnp.float32)

    fwd = jax.jit(functools.partial(patch_embedding_2d, patch_size=P))
    out = fwd(x, pos_param, conv_w, conv_b)
    out = jax.block_until_ready(out)
    assert out.shape == (B, (H // P) * (W // P), E), out.shape

    # Pure-JAX f32 reference of the original (x + pos) -> conv -> rearrange.
    pos_ref = _bilinear_align_corners(pos_param[0, 0], H, W)
    x_plus = x + pos_ref[None, None]
    xp = _extract_patches(x_plus, P)                               # (B, N, K)
    ref = jnp.einsum("bnk,ke->bne", xp, conv_w.reshape(E, -1).T) + conv_b[None, None]
    # bf16 matmul operands (f32 accumulate) + pos/bias fold -> loose tolerance.
    assert jnp.allclose(out, ref, atol=2e-2, rtol=2e-2), float(
        jnp.max(jnp.abs(out - ref)))

    print("KERNEL_OK")
</pallas_src>

<mosaic_0001>
module attributes {stable_mosaic.version = 11 : i64} {
  func.func @_patch_embed_kernel(%arg0: i32, %arg1: i32, %arg2: i32, %arg3: memref<1x16x128xbf16, #tpu.memory_space<vmem>>, %arg4: memref<128x128xbf16, #tpu.memory_space<vmem>>, %arg5: memref<16x128xf32, #tpu.memory_space<vmem>>, %arg6: memref<1x16x128xf32, #tpu.memory_space<vmem>>) attributes {dimension_semantics = [#tpu.dimension_semantics<parallel>, #tpu.dimension_semantics<parallel>, #tpu.dimension_semantics<parallel>], iteration_bounds = array<i64: 2, 1, 1>, scalar_prefetch = 0 : i64, scratch_operands = 0 : i64, tpu.core_type = #tpu.core_type<tc>, window_params = [{transform_indices = @transform_0, window_bounds = array<i64: 1, 16, 128>}, {transform_indices = @transform_1, window_bounds = array<i64: 128, 128>}, {transform_indices = @transform_2, window_bounds = array<i64: 16, 128>}, {transform_indices = @transform_3, window_bounds = array<i64: 1, 16, 128>}]} {
    %c0 = arith.constant 0 : index
    %c0_0 = arith.constant 0 : index
    %c0_1 = arith.constant 0 : index
    %0 = vector.load %arg3[%c0, %c0_0, %c0_1] : memref<1x16x128xbf16, #tpu.memory_space<vmem>>, vector<1x16x128xbf16>
    %1 = vector.shape_cast %0 : vector<1x16x128xbf16> to vector<16x128xbf16>
    %c0_2 = arith.constant 0 : index
    %c0_3 = arith.constant 0 : index
    %2 = vector.load %arg4[%c0_2, %c0_3] : memref<128x128xbf16, #tpu.memory_space<vmem>>, vector<128x128xbf16>
    %cst = arith.constant dense<0.000000e+00> : vector<16x128xf32>
    %3 = tpu.matmul %1, %2, %cst {dimension_numbers = #tpu.dot_dimension_numbers<[1], [0], [0], [1], [0, 0, 1, 1], [], []>} : vector<16x128xbf16>, vector<128x128xbf16>, vector<16x128xf32> -> vector<16x128xf32>
    %c0_4 = arith.constant 0 : index
    %c0_5 = arith.constant 0 : index
    %4 = vector.load %arg5[%c0_4, %c0_5] : memref<16x128xf32, #tpu.memory_space<vmem>>, vector<16x128xf32>
    %5 = arith.addf %3, %4 : vector<16x128xf32>
    %c0_6 = arith.constant 0 : index
    %c0_7 = arith.constant 0 : index
    %c0_8 = arith.constant 0 : index
    %6 = vector.load %arg6[%c0_6, %c0_7, %c0_8] : memref<1x16x128xf32, #tpu.memory_space<vmem>>, vector<1x16x128xf32>
    %7 = vector.shape_cast %6 : vector<1x16x128xf32> to vector<16x128xf32>
    %8 = vector.shape_cast %5 : vector<16x128xf32> to vector<1x16x128xf32>
    tpu.vector_store %arg6[%c0_6, %c0_7, %c0_8], %8 {strides = array<i32>} : memref<1x16x128xf32, #tpu.memory_space<vmem>>, vector<1x16x128xf32>,
    return
  }
  func.func @transform_0(%arg0: i32, %arg1: i32, %arg2: i32) -> (i32, i32, i32) {
    %c0_i32 = arith.constant 0 : i32
    %c0_i32_0 = arith.constant 0 : i32
    return %arg0, %arg1, %c0_i32 : i32, i32, i32
  }
  func.func @transform_1(%arg0: i32, %arg1: i32, %arg2: i32) -> (i32, i32) {
    %c0_i32 = arith.constant 0 : i32
    %c0_i32_0 = arith.constant 0 : i32
    return %c0_i32, %arg2 : i32, i32
  }
  func.func @transform_2(%arg0: i32, %arg1: i32, %arg2: i32) -> (i32, i32) {
    %c0_i32 = arith.constant 0 : i32
    return %arg1, %arg2 : i32, i32
  }
  func.func @transform_3(%arg0: i32, %arg1: i32, %arg2: i32) -> (i32, i32, i32) {
    %c0_i32 = arith.constant 0 : i32
    return %arg0, %arg1, %arg2 : i32, i32, i32
  }
}

</mosaic_0001>

<bundles_post_ra>
// kernel: patch_embedding_2d.1
= control target key start
LH: loop header
LB: loop body
LE: loop exit
PB: predicated region body
PF: predicated region fallthrough
CT: control target
= control target key end

     0   :  { %8 = vsyncpa [#allocation3], 0  ;;  %s883_s0 = inlined_call_operand.vmem [shape: bf16[2,16,128], index: 0, kind: input, shape index: {}]   ;;  %s884_s1 = inlined_call_operand.vmem [shape: bf16[128,128], index: 1, kind: input, shape index: {}]   ;;  %s885_s2 = inlined_call_operand.vmem [shape: f32[16,128], index: 2, kind: input, shape index: {}]   ;;  %s886_s3 = inlined_call_operand.hbm [shape: f32[2,16,128], index: 3, kind: output, shape index: {}]  }
   0x1   :  { %10 = vsyncpa [#allocation3 + $0x1], 0  ;;  %s738_s12 = smov 0   ;;  %s740_s13 = smov 0  }
   0x2   :  { %s742_s14 = smov 0   ;;  %s744_s15 = smov 0  }
   0x3   :  { %s746_s16 = smov 0   ;;  %s748_s17 = smov 0  }
   0x4 LB: > { %s510_s18 = sadd.s32 4294967295, %s711_s17   ;;  %s511_s19 = sadd.s32 4294967294, %s711_s17   ;;  %s711_s17 = sphi %s748_s17, %s16_s17   ;;  %s707_s16 = sphi %s746_s16, %s893_s16   ;;  %s703_s15 = sphi %s744_s15, %s892_s15   ;;  %s699_s14 = sphi %s742_s14, %s891_s14   ;;  %s695_s13 = sphi %s740_s13, %s890_s13   ;;  %s691_s12 = sphi %s738_s12, %s889_s12  }
   0x5   : > { %s35_s20 = sadd.s32 1, %s707_s16  ;;  %s128_s21 = sadd.s32 1, %s699_s14 }
   0x6   : > { %p37_p0 = scmp.ge.s32.totalorder %s35_s20, 2  ;;  %p138_p1 = scmp.ne.s32.totalorder %s699_s14, %s695_s13 }
   0x7   : > { %p139_p2 = scmp.eq.s32.totalorder %s510_s18, 1  ;;  %p144_p3 = scmp.ne.s32.totalorder %s695_s13, %s691_s12 }
   0x8   : > { %s895_s20 = smov (%p37_p0, %s35_s20), 0  ;;  %p145_p5 = scmp.eq.s32.totalorder %s511_s19, 1 }
   0x9   : > { %p778_p4 = por %p139_p2, %p138_p1  ;;  %s121_s23 = ssub.s32 %s707_s16, %s895_s20 }
   0xa   : > { %p516_p6 = scmp.ge.s32.totalorder %s711_s17, 1  ;;  %p126_p7 = scmp.eq.s32.totalorder %s121_s23, 0 }
   0xb   : > { %p785_p8 = por %p145_p5, %p144_p3  ;;  %p195_p9 = scmp.lt.s32.totalorder %s711_s17, 3 }
   0xc   : > { %s791_s25 = scalar_select %p126_p7, %s699_s14, %s128_s21  }
   0xd   : > { %p196_p10 = pnand %p516_p6, %p195_p9 }
   0xe   : > { %v624_v0 = vld [vmem:[%s884_s1] sm:$0xff] (!%p196_p10)   ;;  %v713_v1 = vmov (!%p196_p10), 0.0   ;;  %v625_v2 = vld [vmem:[%s884_s1 + $0x8] sm:$0xff] (!%p196_p10)   ;;  %vm714_vm0 = vmmov (!%p196_p10), 0   ;;  %p236_p11 = scmp.lt.s32.totalorder (!%p196_p10), %s703_s15, 1  ;;  %v626_v3 = vld [vmem:[%s884_s1 + $0x10] sm:$0xff] (!%p196_p10)  }
   0xf   : > { %199 = sbr.rel (%p196_p10) target bundleno = 278 (0x116), region = 32  ;;  %545 = vmatprep.subr.bf16.mxu0 (!%p196_p10), %v713_v1  ;;  %561 = vmatprep.mubr.msk.bf16.mxu0 (!%p196_p10), %vm714_vm0, %v713_v1  ;;  %v627_v4 = vld [vmem:[%s884_s1 + $0x18] sm:$0xff] (!%p196_p10)   ;;  %v628_v5 = vld [vmem:[%s884_s1 + $0x20] sm:$0xff] (!%p196_p10)   ;;  %v629_v6 = vld [vmem:[%s884_s1 + $0x28] sm:$0xff] (!%p196_p10)   ;;  %s535_s10 = sshll.u32 (!%p196_p10), %s703_s15, 8 }
  0x10   : > { %546 = vmatpush3.bf16.msra.mxu0 (!%p196_p10), %v624_v0  ;;  %v630_v7 = vld [vmem:[%s884_s1 + $0x30] sm:$0xff] (!%p196_p10)   ;;  %v631_v8 = vld [vmem:[%s884_s1 + $0x38] sm:$0xff] (!%p196_p10)   ;;  %v278_v10 = vld [vmem:[%s885_s2] sm:$0xff] (!%p196_p10)  ;;  %s835_s21 = scalar_lea.hbm (!%p196_p10), %s886_s3, %s535_s10  ;;  %s715_s26 = smov (!%p196_p10), [#allocation2]  }
  0x11   : > { %547 = vmatprep.subr.bf16.mxu0 (!%p196_p10), %v713_v1  ;;  %v279_v12 = vld [vmem:[%s885_s2 + $0x8] sm:$0xff] (!%p196_p10)  ;;  %s637_s27 = sshll.u32 (!%p196_p10), %s715_s26, 4  ;;  %s638_s27 = int_to_ptr.vmem [resolvable:$false] %s637_s27 }
  0x12   : > { %s639_s28 = scalar_lea.vmem (!%p196_p10), %s638_s27, 512 }
  0x14   : > { %548 = vmatpush3.bf16.msra.mxu0 (!%p196_p10), %v625_v2 }
  0x15   : > { %549 = vmatprep.subr.bf16.mxu0 (!%p196_p10), %v713_v1 }
  0x16   : > { %s237_s30 = scalar_select %p236_p11, %s703_s15, 1 }
  0x18   : > { %s534_s6 = sshll.u32 %s237_s30, 3  ;;  %550 = vmatpush3.bf16.msra.mxu0 %v626_v3  ;;  %s232_s30 = sand.u32 1, %s695_s13  }
  0x19   : > { %s243_s9 = scalar_lea.vmem %s883_s0, %s534_s6  ;;  %551 = vmatprep.subr.bf16.mxu0 %v713_v1  ;;  %s517_s4 = sshll.u32 %s232_s30, 4 }
  0x1a   : > { %v632_v9 = vld [vmem:[%s243_s9] sm:$0xff]   ;;  %s234_s7 = scalar_lea.vmem [#allocation2], %s517_s4  ;;  %s837_s15 = scalar_lea.sflag [#allocation3], %s232_s30 }
  0x1b   : > { %s394_s8 = sshll.u32 %s234_s7, 4  ;;  %s830_s8 = int_to_ptr.vmem [resolvable:$true] %s394_s8 }
  0x1c   : > { %552 = vmatpush3.bf16.msra.mxu0 %v627_v4  ;;  %s633_s23 = scalar_lea.vmem %s830_s8, 256  ;;  %p640_p1 = scmp.lt.s32.totalorder %s830_s8, %s638_s27 }
  0x1d   : > { %553 = vmatprep.subr.bf16.mxu0 %v713_v1  ;;  %p634_p12 = scmp.ne.s32.totalorder %s830_s8, %s633_s23  ;;  %p641_p2 = scmp.lt.s32.totalorder %s639_s28, %s633_s23 }
  0x1f   : > { %p635_p13 = pnand %p634_p12, %p778_p4  ;;  %p642_p3 = por %p641_p2, %p640_p1 }
  0x20   : > { %554 = vmatpush3.bf16.msra.mxu0 %v628_v5 }
  0x21   : > { %555 = vmatprep.subr.bf16.mxu0 %v713_v1  ;;  %p636_p0 = pneg %p635_p13 }
  0x23   : > { %p643_p5 = pnand %p642_p3, %p636_p0 }
  0x24   : > { %556 = vmatpush3.bf16.msra.mxu0 %v629_v6 }
  0x25   : > { %557 = vmatprep.subr.bf16.mxu0 %v713_v1 }
  0x28   : > { %558 = vmatpush3.bf16.msra.mxu0 %v630_v7 }
  0x29   : > { %559 = vmatprep.subr.bf16.mxu0 %v713_v1 }
  0x2c   : > { %560 = vmatpush3.bf16.msra.mxu0 %v631_v8 }
  0x2f   : > { %562 = vmatmul.mubr.bf16.vlgmr.msra.gmra.mrb[0].mxu0 %v632_v9 }
 0x102   : > { %v368_v11 = vpop.f32.mrb[0].mxu0 }
 0x103   : > { %v369_v13 = vadd.f32 %v368_v11, %v278_v10  ;;  %v563_v14 = vpop.f32.mrb[1].mxu0 }
 0x104   : > { %v371_v15 = vpop.f32.mrb[2].mxu0 }
 0x105   : > { %375 = vst [vmem:[%s234_s7] sm:$0xff] %v369_v13  ;;  %v372_v16 = vadd.f32 %v371_v15, %v279_v12  ;;  %v564_v17 = vpop.f32.mrb[3].mxu0 }
 0x107   : > { %376 = vst [vmem:[%s234_s7 + $0x8] sm:$0xff] %v372_v16 }
 0x108   : > { %646 = shalt.err (!%p643_p5)
}
 0x109   : > { %s647_s29 = scalar_lea.hbm %s835_s21, 256  ;;  %s651_s5 = scalar_lea.hbm %s886_s3, 512 }
 0x10a   : > { %p648_p6 = scmp.ne.s32.totalorder %s835_s21, %s647_s29  ;;  %p652_p10 = scmp.lt.u32.totalorder %s835_s21, %s886_s3 }
 0x10b   : > { %p653_p11 = scmp.lt.u32.totalorder %s651_s5, %s647_s29  ;;  %p655_p13 = scmp.lt.u32.totalorder %s647_s29, %s835_s21 }
 0x10c   : > { %p649_p7 = pnand %p648_p6, %p778_p4 }
 0x10d   : > { %p654_p12 = por %p653_p11, %p652_p10 }
 0x10e   : > { %p650_p9 = pneg %p649_p7 }
 0x10f   : > { %p656_p0 = por %p655_p13, %p654_p12 }
 0x111   : > { %p657_p1 = pnand %p656_p0, %p650_p9 }
 0x113   : > { %660 = shalt.err (!%p657_p1)
}
 0x114   : > { %s716_s10 = smov 128   ;;  %s717_s11 = smov 8  }
 0x115   : > { %565 = dma.vmem_to_hbm [thread:$0]  (%p778_p4), %s830_s8, 256, %s835_s21, %s837_s15, %s716_s10, %s716_s10, %s717_s11  }
 0x116 PF: > { %p571_p2 = scmp.ge.s32.totalorder %s711_s17, 2  ;;  %s409_s18 = sand.u32 1, %s691_s12  }
 0x117   : > { %s410_s9 = scalar_lea.sflag [#allocation3], %s409_s18 }
 0x118   : > { %p568_p3 = pnand %p571_p2, %p785_p8 }
 0x11a   : > { %686 = dma.done.wait (!%p568_p3), %s410_s9, 256  }
 0x11b   : > { %688 = vsyncadd (!%p568_p3), %s410_s9, 4294967040  ;;  %s16_s17 = sadd.s32 1, %s711_s17   ;;  %s889_s12 = smov %s695_s13 }
 0x11c   : > { %p13_p5 = scmp.ge.s32.totalorder %s16_s17, 4   ;;  %s890_s13 = smov %s699_s14 }
 0x11d   : > { %s891_s14 = smov %s791_s25  ;;  %s892_s15 = smov %s707_s16 }
 0x11e   : > { %s893_s16 = smov %s895_s20  ;;  %15 = sbr.rel (!%p13_p5) target bundleno = 4 (0x4), region = 73 }
 0x125   :  { %415 = vsyncpa [#allocation3], 1 }
 0x126   :  { %417 = vsyncpa [#allocation3 + $0x1], 1 }

</bundles_post_ra>
